<compile_context>
chip_gen: v6e
topology: v6e:2x2x1
jax: 0.10.0
libtpu: 0.0.40
codegen_flags: <defaults>
</compile_context>

<pallas_src>
import math

import jax
import jax.numpy as jnp
from jax import lax
from jax.experimental import pallas as pl
from jax.experimental.pallas import tpu as pltpu


def make_decoder_layer_kernel(S, E, H, F):
    """Kernel body for one batch element, fixed (seq, d_model, nhead, dff)."""
    Dh = E // H
    eps = 1e-5

    def layer_norm(x, gamma, beta):
        mu = jnp.mean(x, axis=-1, keepdims=True)
        xc = x - mu
        var = jnp.mean(xc * xc, axis=-1, keepdims=True)
        return xc * lax.rsqrt(var + eps) * gamma + beta

    def kernel(q_ref, tgt_ref, wqkv_ref, bqkv_ref, wo_ref, w1_ref, w2_ref,
               vec_ref, out_ref):
        # ---- resident packed parameters (static views / loads) ------------
        w_qkv = wqkv_ref[...]            # (H, E, 3*Dh); Q part pre-scaled
        b_qkv = bqkv_ref[...]            # (H, 1, 3*Dh); Q part pre-scaled
        w_o_h = wo_ref[...]              # (H, Dh, E)
        w_1 = w1_ref[...]                # (E, F)
        w_2 = w2_ref[...]                # (F, E)

        b_o  = vec_ref[0:1, 0:E]
        b_1  = vec_ref[1:2, 0:F]
        b_2  = vec_ref[2:3, 0:E]
        g_1  = vec_ref[3:4, 0:E]
        be_1 = vec_ref[4:5, 0:E]
        g_2  = vec_ref[5:6, 0:E]
        be_2 = vec_ref[6:7, 0:E]

        q_in = q_ref[...]                # (S, E)  query rows of this batch
        tgt  = tgt_ref[...]              # (S, E)  tgt   rows of this batch

        # ---- head-batched Q projection and fused K/V projection -----------
        # (no in-kernel reshape/transpose: head axis comes from packed weights)
        q_bc = jnp.broadcast_to(q_in, (H, S, E))
        t_bc = jnp.broadcast_to(tgt, (H, S, E))
        qh = jnp.einsum('hse,hed->hsd', q_bc, w_qkv[:, :, 0:Dh],
                        preferred_element_type=jnp.float32) + b_qkv[:, :, 0:Dh]
        kvh = jnp.einsum('hse,hed->hsd', t_bc, w_qkv[:, :, Dh:3 * Dh],
                         preferred_element_type=jnp.float32) + b_qkv[:, :, Dh:3 * Dh]
        kh = kvh[:, :, 0:Dh]             # (H, S, Dh)
        vh = kvh[:, :, Dh:2 * Dh]        # (H, S, Dh)

        # ---- one score slab, ONE softmax, one batched P@V -----------------
        s = jnp.einsum('hqd,hkd->hqk', qh, kh,
                       preferred_element_type=jnp.float32)          # (H, S, S)
        s = s - jnp.max(s, axis=-1, keepdims=True)
        p = jnp.exp(s)
        p = p / jnp.sum(p, axis=-1, keepdims=True)
        ctx_h = jnp.einsum('hqk,hkd->hqd', p, vh,
                           preferred_element_type=jnp.float32)      # (H, S, Dh)

        # ---- output projection: batched per-head partials, sum over heads -
        attn_part = jnp.einsum('hsd,hde->hse', ctx_h, w_o_h,
                               preferred_element_type=jnp.float32)  # (H, S, E)
        attn_out = jnp.sum(attn_part, axis=0) + b_o                 # (S, E)

        # ---- residual + LayerNorm1 -----------------------------------------
        x = layer_norm(tgt + attn_out, g_1, be_1)

        # ---- feedforward + residual + LayerNorm2 ---------------------------
        ff = jnp.dot(x, w_1, preferred_element_type=jnp.float32) + b_1
        ff = jnp.maximum(ff, 0.0)
        ff = jnp.dot(ff, w_2, preferred_element_type=jnp.float32) + b_2
        x = layer_norm(x + ff, g_2, be_2)

        out_ref[...] = x.astype(out_ref.dtype)

    return kernel


def pack_params(params, nhead):
    """One-time, head-major parameter packing (hoisted out of the forward)."""
    (w_q, w_k, w_v, w_o, w_1, w_2,
     b_q, b_k, b_v, b_o, b_1, b_2,
     g_1, be_1, g_2, be_2) = params

    E = w_q.shape[0]
    F = w_1.shape[1]
    H = nhead
    assert E % H == 0, "d_model must be divisible by nhead"
    Dh = E // H
    scale = 1.0 / math.sqrt(Dh)

    def heads_in_out(w):      # (E, E) with output columns grouped by head
        return w.reshape(E, H, Dh).transpose(1, 0, 2)       # -> (H, E, Dh)

    # fused QKV slab, 1/sqrt(Dh) folded into the Q part (weights AND bias)
    w_qkv = jnp.concatenate(
        [heads_in_out(w_q) * scale, heads_in_out(w_k), heads_in_out(w_v)],
        axis=-1)                                             # (H, E, 3*Dh)
    b_qkv = jnp.concatenate(
        [(b_q * scale).reshape(H, 1, Dh),
         b_k.reshape(H, 1, Dh),
         b_v.reshape(H, 1, Dh)],
        axis=-1)                                             # (H, 1, 3*Dh)

    w_oh = w_o.reshape(H, Dh, E)                             # (H, Dh, E)

    C = 128                                                  # lane-dense pad

    def row(vec):
        return jnp.pad(vec, (0, C - vec.shape[0]))[None, :]

    vec_pack = jnp.concatenate(
        [row(b_o), row(b_1), row(b_2),
         row(g_1), row(be_1), row(g_2), row(be_2),
         jnp.zeros((1, C), jnp.float32)],                    # pad to 8 rows
        axis=0)                                              # (8, 128)

    return (w_qkv, b_qkv, w_oh, w_1, w_2, vec_pack)


def decoder_layer_forward(tgt, query, packed, nhead):
    """tgt, query: (B, S, d_model) f32.  packed: output of pack_params."""
    w_qkv, b_qkv, w_oh, w_1, w_2, vec_pack = packed
    B, S, E = tgt.shape
    assert query.shape == (B, S, E)
    F = w_1.shape[1]
    H = nhead

    # flatten activations in the wrapper (free); kernel sees 2-D row tiles
    q2d = query.reshape(B * S, E)
    t2d = tgt.reshape(B * S, E)

    kernel = make_decoder_layer_kernel(S, E, H, F)

    grid_spec = pltpu.PrefetchScalarGridSpec(
        num_scalar_prefetch=0,
        grid=(B,),
        in_specs=[
            # per-batch activation tiles (double-buffered by the pipeline)
            pl.BlockSpec((S, E), lambda b: (b, 0)),               # query rows
            pl.BlockSpec((S, E), lambda b: (b, 0)),               # tgt rows
            # resident weights: index_map pins block 0 -> fetched once
            pl.BlockSpec(w_qkv.shape, lambda b: (0, 0, 0)),
            pl.BlockSpec(b_qkv.shape, lambda b: (0, 0, 0)),
            pl.BlockSpec(w_oh.shape, lambda b: (0, 0, 0)),
            pl.BlockSpec(w_1.shape, lambda b: (0, 0)),
            pl.BlockSpec(w_2.shape, lambda b: (0, 0)),
            pl.BlockSpec(vec_pack.shape, lambda b: (0, 0)),
        ],
        out_specs=pl.BlockSpec((S, E), lambda b: (b, 0)),
    )

    out2d = pl.pallas_call(
        kernel,
        out_shape=jax.ShapeDtypeStruct((B * S, E), jnp.float32),
        grid_spec=grid_spec,
        compiler_params=pltpu.CompilerParams(
            dimension_semantics=("parallel",),
            # plenty for these shapes; raise toward ~100 MiB on v5e/v6e (and
            # keep <= 64 MiB on v7x) once production-size row tiles land.
            vmem_limit_bytes=32 * 1024 * 1024,
        ),
    )(q2d, t2d, w_qkv, b_qkv, w_oh, w_1, w_2, vec_pack)

    return out2d.reshape(B, S, E)


def init_params(key, d_model, nhead, dff):
    """Deterministic synthetic parameters.  Weights stored as (in, out)."""
    E, F = d_model, dff
    ks = jax.random.split(key, 16)
    it = iter(range(16))

    def w(shape):
        return 0.1 * jax.random.normal(ks[next(it)], shape, jnp.float32)

    w_q, w_k, w_v = w((E, E)), w((E, E)), w((E, E))
    w_o = w((E, E))
    w_1, w_2 = w((E, F)), w((F, E))
    b_q, b_k, b_v = w((E,)), w((E,)), w((E,))
    b_o, b_1, b_2 = w((E,)), w((F,)), w((E,))
    g_1 = 1.0 + w((E,))
    be_1 = w((E,))
    g_2 = 1.0 + w((E,))
    be_2 = w((E,))
    return (w_q, w_k, w_v, w_o, w_1, w_2,
            b_q, b_k, b_v, b_o, b_1, b_2,
            g_1, be_1, g_2, be_2)


def decoder_layer_reference(tgt, query, params, nhead):
    """Pure-JAX reference mirroring the PyTorch forward (eval mode, no mask)."""
    (w_q, w_k, w_v, w_o, w_1, w_2,
     b_q, b_k, b_v, b_o, b_1, b_2,
     g_1, be_1, g_2, be_2) = params
    B, S, E = tgt.shape
    Dh = E // nhead
    scale = 1.0 / math.sqrt(Dh)

    q = query @ w_q + b_q
    k = tgt @ w_k + b_k
    v = tgt @ w_v + b_v
    qh = q.reshape(B, S, nhead, Dh).transpose(0, 2, 1, 3)
    kh = k.reshape(B, S, nhead, Dh).transpose(0, 2, 1, 3)
    vh = v.reshape(B, S, nhead, Dh).transpose(0, 2, 1, 3)
    s = jnp.einsum('bhid,bhjd->bhij', qh, kh) * scale
    p = jax.nn.softmax(s, axis=-1)
    ctx = jnp.einsum('bhij,bhjd->bhid', p, vh).transpose(0, 2, 1, 3).reshape(B, S, E)
    attn = ctx @ w_o + b_o

    def ln(x, g, b):
        mu = x.mean(-1, keepdims=True)
        var = ((x - mu) ** 2).mean(-1, keepdims=True)
        return (x - mu) / jnp.sqrt(var + 1e-5) * g + b

    x = ln(tgt + attn, g_1, be_1)
    ff = jnp.maximum(x @ w_1 + b_1, 0.0) @ w_2 + b_2
    x = ln(x + ff, g_2, be_2)
    return x


if __name__ == "__main__":
    # Small shapes consistent with the module's forward.
    B, S = 2, 8
    d_model, nhead, dim_feedforward = 32, 4, 64

    key = jax.random.PRNGKey(0)
    k_t, k_q, k_p = jax.random.split(key, 3)

    tgt = jax.random.normal(k_t, (B, S, d_model), jnp.float32)
    query = jax.random.normal(k_q, (B, S, d_model), jnp.float32)
    params = init_params(k_p, d_model, nhead, dim_feedforward)

    # one-time head-major packing (hoisted out of the per-call forward)
    packed = jax.tree_util.tree_map(jax.block_until_ready,
                                    pack_params(params, nhead))

    out = decoder_layer_forward(tgt, query, packed, nhead)
    out = jax.block_until_ready(out)

    ref = decoder_layer_reference(tgt, query, params, nhead)
    assert out.shape == (B, S, d_model)
    assert jnp.allclose(out, ref, atol=1e-4, rtol=1e-4), "mismatch vs reference"

    print("KERNEL_OK")
</pallas_src>

<mosaic_0001>
module attributes {stable_mosaic.version = 11 : i64} {
  func.func @kernel(%arg0: i32, %arg1: memref<8x32xf32, #tpu.memory_space<vmem>>, %arg2: memref<8x32xf32, #tpu.memory_space<vmem>>, %arg3: memref<4x32x24xf32, #tpu.memory_space<vmem>>, %arg4: memref<4x1x24xf32, #tpu.memory_space<vmem>>, %arg5: memref<4x8x32xf32, #tpu.memory_space<vmem>>, %arg6: memref<32x64xf32, #tpu.memory_space<vmem>>, %arg7: memref<64x32xf32, #tpu.memory_space<vmem>>, %arg8: memref<8x128xf32, #tpu.memory_space<vmem>>, %arg9: memref<8x32xf32, #tpu.memory_space<vmem>>) attributes {dimension_semantics = [#tpu.dimension_semantics<parallel>], iteration_bounds = array<i64: 2>, scalar_prefetch = 0 : i64, scratch_operands = 0 : i64, tpu.core_type = #tpu.core_type<tc>, window_params = [{transform_indices = @transform_0, window_bounds = array<i64: 8, 32>}, {transform_indices = @transform_1, window_bounds = array<i64: 8, 32>}, {pipeline_mode = #tpu.pipeline_mode<synchronous>, transform_indices = @transform_2, window_bounds = array<i64: 4, 32, 24>}, {pipeline_mode = #tpu.pipeline_mode<synchronous>, transform_indices = @transform_3, window_bounds = array<i64: 4, 1, 24>}, {pipeline_mode = #tpu.pipeline_mode<synchronous>, transform_indices = @transform_4, window_bounds = array<i64: 4, 8, 32>}, {pipeline_mode = #tpu.pipeline_mode<synchronous>, transform_indices = @transform_5, window_bounds = array<i64: 32, 64>}, {pipeline_mode = #tpu.pipeline_mode<synchronous>, transform_indices = @transform_6, window_bounds = array<i64: 64, 32>}, {pipeline_mode = #tpu.pipeline_mode<synchronous>, transform_indices = @transform_7, window_bounds = array<i64: 8, 128>}, {transform_indices = @transform_8, window_bounds = array<i64: 8, 32>}]} {
    %c0 = arith.constant 0 : index
    %c0_0 = arith.constant 0 : index
    %c0_1 = arith.constant 0 : index
    %0 = vector.load %arg3[%c0, %c0_0, %c0_1] : memref<4x32x24xf32, #tpu.memory_space<vmem>>, vector<4x32x24xf32>
    %c0_2 = arith.constant 0 : index
    %c0_3 = arith.constant 0 : index
    %c0_4 = arith.constant 0 : index
    %1 = vector.load %arg4[%c0_2, %c0_3, %c0_4] : memref<4x1x24xf32, #tpu.memory_space<vmem>>, vector<4x1x24xf32>
    %c0_5 = arith.constant 0 : index
    %c0_6 = arith.constant 0 : index
    %c0_7 = arith.constant 0 : index
    %2 = vector.load %arg5[%c0_5, %c0_6, %c0_7] : memref<4x8x32xf32, #tpu.memory_space<vmem>>, vector<4x8x32xf32>
    %c0_8 = arith.constant 0 : index
    %c0_9 = arith.constant 0 : index
    %3 = vector.load %arg6[%c0_8, %c0_9] : memref<32x64xf32, #tpu.memory_space<vmem>>, vector<32x64xf32>
    %c0_10 = arith.constant 0 : index
    %c0_11 = arith.constant 0 : index
    %4 = vector.load %arg7[%c0_10, %c0_11] : memref<64x32xf32, #tpu.memory_space<vmem>>, vector<64x32xf32>
    %c0_12 = arith.constant 0 : index
    %c0_13 = arith.constant 0 : index
    %5 = vector.load %arg8[%c0_12, %c0_13] : memref<8x128xf32, #tpu.memory_space<vmem>>, vector<1x32xf32>
    %c1 = arith.constant 1 : index
    %c0_14 = arith.constant 0 : index
    %6 = vector.load %arg8[%c1, %c0_14] : memref<8x128xf32, #tpu.memory_space<vmem>>, vector<1x64xf32>
    %c2 = arith.constant 2 : index
    %c0_15 = arith.constant 0 : index
    %7 = vector.load %arg8[%c2, %c0_15] : memref<8x128xf32, #tpu.memory_space<vmem>>, vector<1x32xf32>
    %c3 = arith.constant 3 : index
    %c0_16 = arith.constant 0 : index
    %8 = vector.load %arg8[%c3, %c0_16] : memref<8x128xf32, #tpu.memory_space<vmem>>, vector<1x32xf32>
    %c4 = arith.constant 4 : index
    %c0_17 = arith.constant 0 : index
    %9 = vector.load %arg8[%c4, %c0_17] : memref<8x128xf32, #tpu.memory_space<vmem>>, vector<1x32xf32>
    %c5 = arith.constant 5 : index
    %c0_18 = arith.constant 0 : index
    %10 = vector.load %arg8[%c5, %c0_18] : memref<8x128xf32, #tpu.memory_space<vmem>>, vector<1x32xf32>
    %c6 = arith.constant 6 : index
    %c0_19 = arith.constant 0 : index
    %11 = vector.load %arg8[%c6, %c0_19] : memref<8x128xf32, #tpu.memory_space<vmem>>, vector<1x32xf32>
    %c0_20 = arith.constant 0 : index
    %c0_21 = arith.constant 0 : index
    %12 = vector.load %arg1[%c0_20, %c0_21] : memref<8x32xf32, #tpu.memory_space<vmem>>, vector<8x32xf32>
    %c0_22 = arith.constant 0 : index
    %c0_23 = arith.constant 0 : index
    %13 = vector.load %arg2[%c0_22, %c0_23] : memref<8x32xf32, #tpu.memory_space<vmem>>, vector<8x32xf32>
    %14 = vector.shape_cast %12 : vector<8x32xf32> to vector<1x8x32xf32>
    %15 = vector.broadcast %14 : vector<1x8x32xf32> to vector<4x8x32xf32>
    %16 = vector.shape_cast %13 : vector<8x32xf32> to vector<1x8x32xf32>
    %17 = vector.broadcast %16 : vector<1x8x32xf32> to vector<4x8x32xf32>
    %18 = vector.extract_strided_slice %0 {offsets = [0, 0, 0], sizes = [4, 32, 8], strides = [1, 1, 1]} : vector<4x32x24xf32> to vector<4x32x8xf32>
    "tpu.trace_start"() <{level = 10 : i32, message = "hse,hed->hsd"}> : () -> ()
    %cst = arith.constant dense<0.000000e+00> : vector<4x8x8xf32>
    %19 = tpu.matmul %15, %18, %cst {dimension_numbers = #tpu.dot_dimension_numbers<[2], [1], [1], [2], [0, 0, 0, 1, 1, 2], [0], [0]>} : vector<4x8x32xf32>, vector<4x32x8xf32>, vector<4x8x8xf32> -> vector<4x8x8xf32>
    "tpu.trace_stop"() : () -> ()
    %20 = vector.extract_strided_slice %1 {offsets = [0, 0, 0], sizes = [4, 1, 8], strides = [1, 1, 1]} : vector<4x1x24xf32> to vector<4x1x8xf32>
    %21 = vector.broadcast %20 : vector<4x1x8xf32> to vector<4x8x8xf32>
    %22 = arith.addf %19, %21 : vector<4x8x8xf32>
    %23 = vector.extract_strided_slice %0 {offsets = [0, 0, 8], sizes = [4, 32, 16], strides = [1, 1, 1]} : vector<4x32x24xf32> to vector<4x32x16xf32>
    "tpu.trace_start"() <{level = 10 : i32, message = "hse,hed->hsd"}> : () -> ()
    %cst_24 = arith.constant dense<0.000000e+00> : vector<4x8x16xf32>
    %24 = tpu.matmul %17, %23, %cst_24 {dimension_numbers = #tpu.dot_dimension_numbers<[2], [1], [1], [2], [0, 0, 0, 1, 1, 2], [0], [0]>} : vector<4x8x32xf32>, vector<4x32x16xf32>, vector<4x8x16xf32> -> vector<4x8x16xf32>
    "tpu.trace_stop"() : () -> ()
    %25 = vector.extract_strided_slice %1 {offsets = [0, 0, 8], sizes = [4, 1, 16], strides = [1, 1, 1]} : vector<4x1x24xf32> to vector<4x1x16xf32>
    %26 = vector.broadcast %25 : vector<4x1x16xf32> to vector<4x8x16xf32>
    %27 = arith.addf %24, %26 : vector<4x8x16xf32>
    %28 = vector.extract_strided_slice %27 {offsets = [0, 0, 0], sizes = [4, 8, 8], strides = [1, 1, 1]} : vector<4x8x16xf32> to vector<4x8x8xf32>
    %29 = vector.extract_strided_slice %27 {offsets = [0, 0, 8], sizes = [4, 8, 8], strides = [1, 1, 1]} : vector<4x8x16xf32> to vector<4x8x8xf32>
    "tpu.trace_start"() <{level = 10 : i32, message = "hqd,hkd->hqk"}> : () -> ()
    %cst_25 = arith.constant dense<0.000000e+00> : vector<4x8x8xf32>
    %30 = tpu.matmul %22, %28, %cst_25 {dimension_numbers = #tpu.dot_dimension_numbers<[2], [2], [1], [1], [0, 0, 0, 1, 1, 1], [0], [0]>} : vector<4x8x8xf32>, vector<4x8x8xf32>, vector<4x8x8xf32> -> vector<4x8x8xf32>
    "tpu.trace_stop"() : () -> ()
    %cst_26 = arith.constant dense<0xFF800000> : vector<4x8xf32>
    %31 = vector.multi_reduction <maximumf>, %30, %cst_26 [2] : vector<4x8x8xf32> to vector<4x8xf32>
    %32 = vector.shape_cast %31 : vector<4x8xf32> to vector<4x8x1xf32>
    %33 = vector.broadcast %32 : vector<4x8x1xf32> to vector<4x8x8xf32>
    %34 = arith.subf %30, %33 : vector<4x8x8xf32>
    %35 = math.exp %34 : vector<4x8x8xf32>
    %cst_27 = arith.constant dense<0.000000e+00> : vector<4x8xf32>
    %36 = vector.multi_reduction <add>, %35, %cst_27 [2] : vector<4x8x8xf32> to vector<4x8xf32>
    %37 = vector.shape_cast %36 : vector<4x8xf32> to vector<4x8x1xf32>
    %38 = vector.broadcast %37 : vector<4x8x1xf32> to vector<4x8x8xf32>
    %39 = arith.divf %35, %38 : vector<4x8x8xf32>
    "tpu.trace_start"() <{level = 10 : i32, message = "hqk,hkd->hqd"}> : () -> ()
    %cst_28 = arith.constant dense<0.000000e+00> : vector<4x8x8xf32>
    %40 = tpu.matmul %39, %29, %cst_28 {dimension_numbers = #tpu.dot_dimension_numbers<[2], [1], [1], [2], [0, 0, 0, 1, 1, 2], [0], [0]>} : vector<4x8x8xf32>, vector<4x8x8xf32>, vector<4x8x8xf32> -> vector<4x8x8xf32>
    "tpu.trace_stop"() : () -> ()
    "tpu.trace_start"() <{level = 10 : i32, message = "hsd,hde->hse"}> : () -> ()
    %cst_29 = arith.constant dense<0.000000e+00> : vector<4x8x32xf32>
    %41 = tpu.matmul %40, %2, %cst_29 {dimension_numbers = #tpu.dot_dimension_numbers<[2], [1], [1], [2], [0, 0, 0, 1, 1, 2], [0], [0]>} : vector<4x8x8xf32>, vector<4x8x32xf32>, vector<4x8x32xf32> -> vector<4x8x32xf32>
    "tpu.trace_stop"() : () -> ()
    %cst_30 = arith.constant dense<0.000000e+00> : vector<8x32xf32>
    %42 = vector.multi_reduction <add>, %41, %cst_30 [0] : vector<4x8x32xf32> to vector<8x32xf32>
    %43 = vector.broadcast %5 : vector<1x32xf32> to vector<8x32xf32>
    %44 = arith.addf %42, %43 : vector<8x32xf32>
    %45 = arith.addf %13, %44 : vector<8x32xf32>
    %cst_31 = arith.constant dense<0.000000e+00> : vector<8xf32>
    %46 = vector.multi_reduction <add>, %45, %cst_31 [1] : vector<8x32xf32> to vector<8xf32>
    %47 = vector.shape_cast %46 : vector<8xf32> to vector<8x1xf32>
    %cst_32 = arith.constant 3.200000e+01 : f32
    %48 = vector.broadcast %cst_32 : f32 to vector<8x1xf32>
    %49 = arith.divf %47, %48 : vector<8x1xf32>
    %50 = vector.broadcast %49 : vector<8x1xf32> to vector<8x32xf32>
    %51 = arith.subf %45, %50 : vector<8x32xf32>
    %52 = arith.mulf %51, %51 : vector<8x32xf32>
    %cst_33 = arith.constant dense<0.000000e+00> : vector<8xf32>
    %53 = vector.multi_reduction <add>, %52, %cst_33 [1] : vector<8x32xf32> to vector<8xf32>
    %54 = vector.shape_cast %53 : vector<8xf32> to vector<8x1xf32>
    %cst_34 = arith.constant 3.200000e+01 : f32
    %55 = vector.broadcast %cst_34 : f32 to vector<8x1xf32>
    %56 = arith.divf %54, %55 : vector<8x1xf32>
    %cst_35 = arith.constant 9.99999974E-6 : f32
    %57 = vector.broadcast %cst_35 : f32 to vector<8x1xf32>
    %58 = arith.addf %56, %57 : vector<8x1xf32>
    %59 = math.rsqrt %58 : vector<8x1xf32>
    %60 = vector.broadcast %59 : vector<8x1xf32> to vector<8x32xf32>
    %61 = arith.mulf %51, %60 : vector<8x32xf32>
    %62 = vector.broadcast %8 : vector<1x32xf32> to vector<8x32xf32>
    %63 = arith.mulf %61, %62 : vector<8x32xf32>
    %64 = vector.broadcast %9 : vector<1x32xf32> to vector<8x32xf32>
    %65 = arith.addf %63, %64 : vector<8x32xf32>
    %cst_36 = arith.constant dense<0.000000e+00> : vector<8x64xf32>
    %66 = tpu.matmul %65, %3, %cst_36 {dimension_numbers = #tpu.dot_dimension_numbers<[1], [0], [0], [1], [0, 0, 1, 1], [], []>} : vector<8x32xf32>, vector<32x64xf32>, vector<8x64xf32> -> vector<8x64xf32>
    %67 = vector.broadcast %6 : vector<1x64xf32> to vector<8x64xf32>
    %68 = arith.addf %66, %67 : vector<8x64xf32>
    %cst_37 = arith.constant 0.000000e+00 : f32
    %69 = vector.broadcast %cst_37 : f32 to vector<8x64xf32>
    %70 = arith.maximumf %68, %69 : vector<8x64xf32>
    %cst_38 = arith.constant dense<0.000000e+00> : vector<8x32xf32>
    %71 = tpu.matmul %70, %4, %cst_38 {dimension_numbers = #tpu.dot_dimension_numbers<[1], [0], [0], [1], [0, 0, 1, 1], [], []>} : vector<8x64xf32>, vector<64x32xf32>, vector<8x32xf32> -> vector<8x32xf32>
    %72 = vector.broadcast %7 : vector<1x32xf32> to vector<8x32xf32>
    %73 = arith.addf %71, %72 : vector<8x32xf32>
    %74 = arith.addf %65, %73 : vector<8x32xf32>
    %cst_39 = arith.constant dense<0.000000e+00> : vector<8xf32>
    %75 = vector.multi_reduction <add>, %74, %cst_39 [1] : vector<8x32xf32> to vector<8xf32>
    %76 = vector.shape_cast %75 : vector<8xf32> to vector<8x1xf32>
    %cst_40 = arith.constant 3.200000e+01 : f32
    %77 = vector.broadcast %cst_40 : f32 to vector<8x1xf32>
    %78 = arith.divf %76, %77 : vector<8x1xf32>
    %79 = vector.broadcast %78 : vector<8x1xf32> to vector<8x32xf32>
    %80 = arith.subf %74, %79 : vector<8x32xf32>
    %81 = arith.mulf %80, %80 : vector<8x32xf32>
    %cst_41 = arith.constant dense<0.000000e+00> : vector<8xf32>
    %82 = vector.multi_reduction <add>, %81, %cst_41 [1] : vector<8x32xf32> to vector<8xf32>
    %83 = vector.shape_cast %82 : vector<8xf32> to vector<8x1xf32>
    %cst_42 = arith.constant 3.200000e+01 : f32
    %84 = vector.broadcast %cst_42 : f32 to vector<8x1xf32>
    %85 = arith.divf %83, %84 : vector<8x1xf32>
    %cst_43 = arith.constant 9.99999974E-6 : f32
    %86 = vector.broadcast %cst_43 : f32 to vector<8x1xf32>
    %87 = arith.addf %85, %86 : vector<8x1xf32>
    %88 = math.rsqrt %87 : vector<8x1xf32>
    %89 = vector.broadcast %88 : vector<8x1xf32> to vector<8x32xf32>
    %90 = arith.mulf %80, %89 : vector<8x32xf32>
    %91 = vector.broadcast %10 : vector<1x32xf32> to vector<8x32xf32>
    %92 = arith.mulf %90, %91 : vector<8x32xf32>
    %93 = vector.broadcast %11 : vector<1x32xf32> to vector<8x32xf32>
    %94 = arith.addf %92, %93 : vector<8x32xf32>
    %c0_44 = arith.constant 0 : index
    %c0_45 = arith.constant 0 : index
    %95 = vector.load %arg9[%c0_44, %c0_45] : memref<8x32xf32, #tpu.memory_space<vmem>>, vector<8x32xf32>
    tpu.vector_store %arg9[%c0_44, %c0_45], %94 {strides = array<i32>} : memref<8x32xf32, #tpu.memory_space<vmem>>, vector<8x32xf32>,
    return
  }
  func.func @transform_0(%arg0: i32) -> (i32, i32) {
    %c0_i32 = arith.constant 0 : i32
    %c0_i32_0 = arith.constant 0 : i32
    return %arg0, %c0_i32 : i32, i32
  }
  func.func @transform_1(%arg0: i32) -> (i32, i32) {
    %c0_i32 = arith.constant 0 : i32
    %c0_i32_0 = arith.constant 0 : i32
    return %arg0, %c0_i32 : i32, i32
  }
  func.func @transform_2(%arg0: i32) -> (i32, i32, i32) {
    %c0_i32 = arith.constant 0 : i32
    %c0_i32_0 = arith.constant 0 : i32
    %c0_i32_1 = arith.constant 0 : i32
    %c0_i32_2 = arith.constant 0 : i32
    return %c0_i32, %c0_i32_0, %c0_i32_1 : i32, i32, i32
  }
  func.func @transform_3(%arg0: i32) -> (i32, i32, i32) {
    %c0_i32 = arith.constant 0 : i32
    %c0_i32_0 = arith.constant 0 : i32
    %c0_i32_1 = arith.constant 0 : i32
    %c0_i32_2 = arith.constant 0 : i32
    return %c0_i32, %c0_i32_0, %c0_i32_1 : i32, i32, i32
  }
  func.func @transform_4(%arg0: i32) -> (i32, i32, i32) {
    %c0_i32 = arith.constant 0 : i32
    %c0_i32_0 = arith.constant 0 : i32
    %c0_i32_1 = arith.constant 0 : i32
    %c0_i32_2 = arith.constant 0 : i32
    return %c0_i32, %c0_i32_0, %c0_i32_1 : i32, i32, i32
  }
  func.func @transform_5(%arg0: i32) -> (i32, i32) {
    %c0_i32 = arith.constant 0 : i32
    %c0_i32_0 = arith.constant 0 : i32
    %c0_i32_1 = arith.constant 0 : i32
    return %c0_i32, %c0_i32_0 : i32, i32
  }
  func.func @transform_6(%arg0: i32) -> (i32, i32) {
    %c0_i32 = arith.constant 0 : i32
    %c0_i32_0 = arith.constant 0 : i32
    %c0_i32_1 = arith.constant 0 : i32
    return %c0_i32, %c0_i32_0 : i32, i32
  }
  func.func @transform_7(%arg0: i32) -> (i32, i32) {
    %c0_i32 = arith.constant 0 : i32
    %c0_i32_0 = arith.constant 0 : i32
    %c0_i32_1 = arith.constant 0 : i32
    return %c0_i32, %c0_i32_0 : i32, i32
  }
  func.func @transform_8(%arg0: i32) -> (i32, i32) {
    %c0_i32 = arith.constant 0 : i32
    %c0_i32_0 = arith.constant 0 : i32
    return %arg0, %c0_i32 : i32, i32
  }
}

</mosaic_0001>

<bundles_post_ra>
// kernel: tpu_custom_call.1
= control target key start
LH: loop header
LB: loop body
LE: loop exit
PB: predicated region body
PF: predicated region fallthrough
CT: control target
= control target key end

     0   :  { %13 = vsyncpa [#allocation3], 0  ;;  %s3178_s0 = inlined_call_operand.vmem [shape: f32[16,32], index: 0, kind: input, shape index: {}]   ;;  %s3179_s1 = inlined_call_operand.vmem [shape: f32[16,32], index: 1, kind: input, shape index: {}]   ;;  %s3180_s2 = inlined_call_operand.vmem [shape: f32[4,32,24], index: 2, kind: input, shape index: {}]   ;;  %s3181_s3 = inlined_call_operand.vmem [shape: f32[4,1,24], index: 3, kind: input, shape index: {}]   ;;  %s3182_s4 = inlined_call_operand.vmem [shape: f32[4,8,32], index: 4, kind: input, shape index: {}]   ;;  %s3183_s5 = inlined_call_operand.vmem [shape: f32[32,64], index: 5, kind: input, shape index: {}]   ;;  %s3184_s6 = inlined_call_operand.vmem [shape: f32[64,32], index: 6, kind: input, shape index: {}]   ;;  %s3185_s7 = inlined_call_operand.vmem [shape: f32[8,128], index: 7, kind: input, shape index: {}]   ;;  %s3186_s8 = inlined_call_operand.hbm [shape: f32[16,32], index: 8, kind: output, shape index: {}]  }
   0x1   :  { %15 = vsyncpa [#allocation3 + $0x1], 0  ;;  %s2755_s27 = smov 0   ;;  %s2757_s28 = smov 0  }
   0x2   :  { %s2759_s29 = smov 0   ;;  %s2761_s30 = smov 0  }
   0x3 LB: > { %s2776_s9 = sadd.s32 4294967295, %s2704_s30   ;;  %s2278_s10 = sadd.s32 4294967294, %s2704_s30   ;;  %s2704_s30 = sphi %s2761_s30, %s3192_s30   ;;  %s2700_s29 = sphi %s2759_s29, %s3191_s29   ;;  %s2696_s28 = sphi %s2757_s28, %s3190_s28   ;;  %s2692_s27 = sphi %s2755_s27, %s3189_s27  }
   0x4   : > { %s2780_s11 = sadd.s32 1, %s2704_s30   ;;  %s206_s12 = sadd.s32 1, %s2700_s29 }
   0x5   : > { %s203_s13 = ssub.s32 %s2704_s30, %s2780_s11  ;;  %p216_p0 = scmp.ne.s32.totalorder %s2700_s29, %s2696_s28 }
   0x6   : > { %p204_p1 = scmp.eq.s32.totalorder %s203_s13, 0  ;;  %p217_p2 = scmp.eq.s32.totalorder %s2776_s9, 1 }
   0x7   : > { %p222_p3 = scmp.ne.s32.totalorder %s2696_s28, %s2692_s27  ;;  %p223_p4 = scmp.eq.s32.totalorder %s2278_s10, 1 }
   0x8   : > { %s2791_s14 = scalar_select %p204_p1, %s2700_s29, %s206_s12  }
   0x9   : > { %p2793_p5 = por %p217_p2, %p216_p0  ;;  %p2797_p6 = por %p223_p4, %p222_p3 }
   0xa   : > { %p2281_p7 = scmp.ge.s32.totalorder %s2704_s30, 1  ;;  %p273_p8 = scmp.lt.s32.totalorder %s2704_s30, 3 }
   0xc   : > { %p274_p9 = pnand %p2281_p7, %p273_p8 }
   0xd   : > { %s2706_s21 = smov (!%p274_p9), 120   ;;  %p310_p10 = scmp.lt.s32.totalorder (!%p274_p9), %s2776_s9, 1 }
   0xe   : > { %277 = sbr.rel (%p274_p9) target bundleno = 2286 (0x8ee), region = 52  ;;  %s307_s24 = sand.u32 (!%p274_p9), 1, %s2696_s28  }
   0xf   : > { %s2282_s25 = sshll.u32 (!%p274_p9), %s307_s24, 3  ;;  %s2323_s19 = sshll.u32 (!%p274_p9), %s2776_s9, 7 }
  0x10   : > { %s309_s20 = scalar_lea.vmem (!%p274_p9), [#allocation2], %s2282_s25  ;;  %s2709_s12 = smov (!%p274_p9), [#allocation2]  }
  0x11   : > { %s2648_s17 = sshll.u32 (!%p274_p9), %s2709_s12, 4  ;;  %s2649_s17 = int_to_ptr.vmem [resolvable:$false] %s2648_s17 }
  0x13   : > { %v325_v0 = vld [vmem:[%s3180_s2 + $0x38] sm:$0xff]  ;;  %v320_v2 = vld [vmem:[%s3180_s2 + $0x10] sm:$0xff]  ;;  %v319_v3 = vld [vmem:[%s3180_s2 + $0x8] sm:$0xff]  ;;  %v2707_v4 = vmov 0.0   ;;  %s2821_s26 = scalar_select %p310_p10, %s2776_s9, 1  ;;  %vm387_vm0 = vcmask 261120  }
  0x14   : > { %v321_v1 = vld [vmem:[%s3180_s2 + $0x18] sm:$0xff]  ;;  %773 = vrot.lane.b32.xlu1 %v325_v0, %s2706_s21  ;;  %2404 = vmatprep.subr.mxu0 %v2707_v4  ;;  %v324_v5 = vld [vmem:[%s3180_s2 + $0x30] sm:$0xff]  ;;  %v318_v6 = vld [vmem:[%s3180_s2] sm:$0xff]  ;;  %vm2708_vm1 = vmmov 0   ;;  %vm1030_vm2 = vcmask 64512   ;;  %vm2094_vm3 = vcmask 523264  }
  0x15   : > { %681 = vrot.lane.b32.xlu0 %v321_v1, %s2706_s21  ;;  %2415 = vmatprep.subr.mxu1 %v2707_v4  ;;  %s2283_s13 = sshll.u32 %s2821_s26, 3  ;;  %v323_v7 = vld [vmem:[%s3180_s2 + $0x28] sm:$0xff]  ;;  %v322_v9 = vld [vmem:[%s3180_s2 + $0x20] sm:$0xff]  ;;  %v329_v10 = vld [vmem:[%s3180_s2 + $0x58] sm:$0xff]  ;;  %s2205_s26 = scalar_lea.hbm %s3186_s8, %s2323_s19 }
  0x16   : > { %2405 = vmatpush3.msra.mxu0 %v321_v1  ;;  %2416 = vmatpush3.msra.mxu1 %v325_v0  ;;  %s313_s22 = scalar_lea.vmem %s3178_s0, %s2283_s13  ;;  %v328_v11 = vld [vmem:[%s3180_s2 + $0x50] sm:$0xff]  ;;  %v333_v12 = vld [vmem:[%s3180_s2 + $0x78] sm:$0xff]  ;;  %v327_v13 = vld [vmem:[%s3180_s2 + $0x48] sm:$0xff]  ;;  %s317_s23 = scalar_lea.vmem %s3179_s1, %s2283_s13 }
  0x17   : > { %2406 = vmatprep.subr.mxu0 %v2707_v4  ;;  %2417 = vmatprep.subr.mxu1 %v2707_v4  ;;  %v361_v8 = vld [vmem:[%s313_s22] sm:$0xff]  ;;  %v332_v14 = vld [vmem:[%s3180_s2 + $0x70] sm:$0xff]  ;;  %v331_v16 = vld [vmem:[%s3180_s2 + $0x68] sm:$0xff]  ;;  %s2207_s22 = sshll.u32 %s309_s20, 4  ;;  %s2194_s13 = scalar_lea.sflag [#allocation3], %s307_s24  ;;  %s2208_s22 = int_to_ptr.vmem [resolvable:$true] %s2207_s22 }
  0x18   : > { %677 = vrot.lane.b32.xlu1 %v319_v3, %s2706_s21  ;;  %2407 = vmatpush3.msra.mxu0 %v320_v2  ;;  %v326_v15 = vld [vmem:[%s3180_s2 + $0x40] sm:$0xff]  ;;  %s2644_s10 = scalar_lea.vmem %s2208_s22, 128  ;;  %s2650_s9 = scalar_lea.vmem %s2649_s17, 256 }
  0x19   : > { %679 = vrot.lane.b32.xlu0 %v320_v2, %s2706_s21  ;;  %2418 = vmatpush3.msra.mxu1 %v324_v5  ;;  %v330_v17 = vld [vmem:[%s3180_s2 + $0x60] sm:$0xff]  ;;  %p2645_p11 = scmp.ne.s32.totalorder %s2208_s22, %s2644_s10  ;;  %p2651_p0 = scmp.lt.s32.totalorder %s2208_s22, %s2649_s17 }
  0x1a   : > { %2408 = vmatprep.subr.mxu0 %v2707_v4  ;;  %2419 = vmatprep.subr.mxu1 %v2707_v4  ;;  %v2914_v18 = vld [vmem:[%s3181_s3] ss:$0 sm:$0xff]  ;;  %v2919_v19 = vld [vmem:[%s3181_s3 + $0x1] ss:$0 sm:$0xff]  ;;  %v2928_v20 = vld [vmem:[%s3181_s3 + $0x2] ss:$0 sm:$0xff]  ;;  %p2652_p1 = scmp.lt.s32.totalorder %s2650_s9, %s2644_s10 }
  0x1b   : > { %2409 = vmatpush3.msra.mxu0 %v319_v3  ;;  %2420 = vmatpush3.msra.mxu1 %v323_v7  ;;  %v2933_v21 = vld [vmem:[%s3181_s3 + $0x3] ss:$0 sm:$0xff]  ;;  %p2646_p12 = pnand %p2645_p11, %p2793_p5 }
  0x1c   : > { %675 = vrot.lane.b32.xlu1 %v318_v6, %s2706_s21  ;;  %2410 = vmatprep.subr.mxu0 %v2707_v4  ;;  %v2947_v26 = vld [vmem:[%s317_s23] sm:$0xff]  ;;  %p2653_p2 = por %p2652_p1, %p2651_p0 }
  0x1d   : > { %771 = vrot.lane.b32.xlu0 %v324_v5, %s2706_s21  ;;  %2412 = vmatprep.mubr.msk.f32.mxu0 %vm2708_vm1, %v2707_v4  ;;  %p2647_p13 = pneg %p2646_p12 }
  0x1e   : > { %2411 = vmatpush3.msra.mxu0 %v318_v6  ;;  %2421 = vmatprep.subr.mxu1 %v2707_v4 }
  0x1f   : > { %2426 = vmatprep.subr.mxu0 %v2707_v4  ;;  %2413 = vmatmul.mubr.msk.f32.vlgmr.msra.gmra.mxu0 %vm387_vm0, %v361_v8  ;;  %p2654_p3 = pnand %p2653_p2, %p2647_p13 }
  0x20   : > { %767 = vrot.lane.b32.xlu1 %v322_v9, %s2706_s21  ;;  %2422 = vmatpush3.msra.mxu1 %v322_v9 }
  0x21   : > { %769 = vrot.lane.b32.xlu0 %v323_v7, %s2706_s21  ;;  %2427 = vmatpush3.msra.mxu0 %v329_v10 }
  0x22   : > { %2423 = vmatprep.mubr.msk.f32.mxu1 %vm2708_vm1, %v2707_v4  ;;  %2428 = vmatprep.subr.mxu0 %v2707_v4 }
  0x23   : > { %2437 = vmatprep.subr.mxu1 %v2707_v4  ;;  %2424 = vmatmul.mubr.msk.f32.vlgmr.msra.gmra.mxu1 %vm387_vm0, %v361_v8 }
  0x24   : > { %860 = vrot.lane.b32.xlu1 %v328_v11, %s2706_s21  ;;  %2429 = vmatpush3.msra.mxu0 %v328_v11 }
  0x25   : > { %862 = vrot.lane.b32.xlu0 %v329_v10, %s2706_s21  ;;  %2438 = vmatpush3.msra.mxu1 %v333_v12 }
  0x26   : > { %2430 = vmatprep.subr.mxu0 %v2707_v4  ;;  %2439 = vmatprep.subr.mxu1 %v2707_v4 }
  0x27   : > { %2431 = vmatpush3.msra.mxu0 %v327_v13  ;;  %2440 = vmatpush3.msra.mxu1 %v332_v14 }
  0x28   : > { %858 = vrot.lane.b32.xlu1 %v327_v13, %s2706_s21  ;;  %2432 = vmatprep.subr.mxu0 %v2707_v4 }
  0x29   : > { %951 = vrot.lane.b32.xlu0 %v333_v12, %s2706_s21  ;;  %2441 = vmatprep.subr.mxu1 %v2707_v4 }
  0x2a   : > { %2433 = vmatpush3.msra.mxu0 %v326_v15  ;;  %2442 = vmatpush3.msra.mxu1 %v331_v16 }
  0x2b   : > { %2434 = vmatprep.mubr.msk.f32.mxu0 %vm2708_vm1, %v2707_v4  ;;  %2443 = vmatprep.subr.mxu1 %v2707_v4 }
  0x2c   : > { %856 = vrot.lane.b32.xlu1 %v326_v15, %s2706_s21  ;;  %2448 = vmatprep.subr.mxu0 %v2707_v4 }
  0x2d   : > { %949 = vrot.lane.b32.xlu0 %v332_v14, %s2706_s21  ;;  %2435 = vmatmul.mubr.msk.f32.vlgmr.msra.gmra.mxu0 %vm387_vm0, %v361_v8 }
  0x2e   : > { %2444 = vmatpush3.msra.mxu1 %v330_v17  ;;  %2445 = vmatprep.mubr.msk.f32.mxu1 %vm2708_vm1, %v2707_v4 }
  0x2f   : > { %2459 = vmatprep.subr.mxu1 %v2707_v4  ;;  %2446 = vmatmul.mubr.msk.f32.vlgmr.msra.gmra.mxu1 %vm387_vm0, %v361_v8 }
  0x30   : > { %945 = vrot.lane.b32.xlu1 %v330_v17, %s2706_s21  ;;  %2456 = vmatprep.mubr.msk.f32.mxu0 %vm2708_vm1, %v2707_v4 }
  0x31   : > { %947 = vrot.lane.b32.xlu0 %v331_v16, %s2706_s21  ;;  %2467 = vmatprep.mubr.msk.f32.mxu1 %vm2708_vm1, %v2707_v4 }
  0x34   : > { %779 = vrot.lane.b32.xlu1 %v2919_v19, %s2706_s21 }
  0x35   : > { %687 = vrot.lane.b32.xlu0 %v2914_v18, %s2706_s21 }
  0x38   : > { %957 = vrot.lane.b32.xlu1 %v2933_v21, %s2706_s21 }
  0x39   : > { %868 = vrot.lane.b32.xlu0 %v2928_v20, %s2706_s21 }
  0x86   : > { %v774_v22 = vpop.permute.xlu1 %773 }
  0x87   : > { %v682_v23 = vpop.permute.xlu0 %681  ;;  %2460 = vmatpush3.msra.mxu1 %v774_v22 }
  0x88   : > { %2449 = vmatpush3.msra.mxu0 %v682_v23  ;;  %2461 = vmatprep.subr.mxu1 %v2707_v4 }
  0x89   : > { %2450 = vmatprep.subr.mxu0 %v2707_v4 }
  0x8a   : > { %v678_v25 = vpop.permute.xlu1 %677 }
  0x8b   : > { %v680_v24 = vpop.permute.xlu0 %679 }
  0x8c   : > { %2451 = vmatpush3.msra.mxu0 %v680_v24 }
  0x8d   : > { %2452 = vmatprep.subr.mxu0 %v2707_v4 }
  0x8e   : > { %2453 = vmatpush3.msra.mxu0 %v678_v25  ;;  %v676_v28 = vpop.permute.xlu1 %675 }
  0x8f   : > { %v772_v27 = vpop.permute.xlu0 %771  ;;  %2454 = vmatprep.subr.mxu0 %v2707_v4 }
  0x90   : > { %2455 = vmatpush3.msra.mxu0 %v676_v28  ;;  %2462 = vmatpush3.msra.mxu1 %v772_v27 }
  0x91   : > { %2457 = vmatmul.mubr.msk.f32.vlgmr.msra.gmra.mxu0 %vm387_vm0, %v2947_v26  ;;  %2463 = vmatprep.subr.mxu1 %v2707_v4 }
  0x92   : > { %2470 = vmatprep.subr.mxu0 %v2707_v4  ;;  %2478 = vmatprep.mubr.msk.f32.mxu0 %vm2708_vm1, %v2707_v4  ;;  %v768_v30 = vpop.permute.xlu1 %767 }
  0x93   : > { %v770_v29 = vpop.permute.xlu0 %769 }
  0x94   : > { %2464 = vmatpush3.msra.mxu1 %v770_v29 }
  0x95   : > { %2465 = vmatprep.subr.mxu1 %v2707_v4 }
  0x96   : > { %2466 = vmatpush3.msra.mxu1 %v768_v30  ;;  %v861_v32 = vpop.permute.xlu1 %860 }
  0x97   : > { %v863_v31 = vpop.permute.xlu0 %862  ;;  %2468 = vmatmul.mubr.msk.f32.vlgmr.msra.gmra.mxu1 %vm387_vm0, %v2947_v26  ;;  %2481 = vmatprep.subr.mxu1 %v2707_v4 }
  0x98   : > { %2471 = vmatpush3.msra.mxu0 %v863_v31  ;;  %2489 = vmatprep.mubr.msk.f32.mxu1 %vm2708_vm1, %v2707_v4 }
  0x99   : > { %2472 = vmatprep.subr.mxu0 %v2707_v4 }
  0x9a   : > { %2473 = vmatpush3.msra.mxu0 %v861_v32  ;;  %v859_v34 = vpop.permute.xlu1 %858 }
  0x9b   : > { %v952_v33 = vpop.permute.xlu0 %951  ;;  %2474 = vmatprep.subr.mxu0 %v2707_v4 }
  0x9c   : > { %2482 = vmatpush3.msra.mxu1 %v952_v33  ;;  %2475 = vmatpush3.msra.mxu0 %v859_v34 }
  0x9d   : > { %2476 = vmatprep.subr.mxu0 %v2707_v4  ;;  %2483 = vmatprep.subr.mxu1 %v2707_v4 }
  0x9e   : > { %v857_v36 = vpop.permute.xlu1 %856 }
  0x9f   : > { %v950_v35 = vpop.permute.xlu0 %949  ;;  %2477 = vmatpush3.msra.mxu0 %v857_v36 }
  0xa0   : > { %2484 = vmatpush3.msra.mxu1 %v950_v35  ;;  %2479 = vmatmul.mubr.msk.f32.vlgmr.msra.gmra.mxu0 %vm387_vm0, %v2947_v26 }
  0xa1   : > { %2485 = vmatprep.subr.mxu1 %v2707_v4  ;;  %2492 = vmatprep.subr.mxu0 %v2707_v4 }
  0xa2   : > { %2494 = vmatprep.mubr.msk.f32.mxu0 %vm2708_vm1, %v2707_v4  ;;  %v946_v38 = vpop.permute.xlu1 %945 }
  0xa3   : > { %v948_v37 = vpop.permute.xlu0 %947 }
  0xa4   : > { %2486 = vmatpush3.msra.mxu1 %v948_v37 }
  0xa5   : > { %2487 = vmatprep.subr.mxu1 %v2707_v4 }
  0xa6   : > { %2488 = vmatpush3.msra.mxu1 %v946_v38  ;;  %v780_v52 = vpop.permute.xlu1 %779 }
  0xa7   : > { %2490 = vmatmul.mubr.msk.f32.vlgmr.msra.gmra.mxu1 %vm387_vm0, %v2947_v26  ;;  %2507 = vmatprep.subr.mxu1 %v2707_v4  ;;  %v688_v47 = vpop.permute.xlu0 %687 }
  0xa8   : > { %2509 = vmatprep.mubr.msk.f32.mxu1 %vm2708_vm1, %v2707_v4 }
  0xaa   : > { %v958_v62 = vpop.permute.xlu1 %957 }
  0xab   : > { %v869_v57 = vpop.permute.xlu0 %868 }
  0xdf   : > { %v457_v39 = vpop.f32.mrf.mxu0 }
  0xe0   : > { %v458_v51 = vadd.f32 %v2914_v18, %v457_v39 }
  0xe1   : > { %v2414_v40 = vpop.f32.mrf.mxu0 }
  0xe3   : > { %v527_v41 = vpop.f32.mrf.mxu1 }
  0xe4   : > { %v528_v56 = vadd.f32 %v2919_v19, %v527_v41 }
  0xe5   : > { %v2425_v42 = vpop.f32.mrf.mxu1 }
  0xed   : > { %v597_v43 = vpop.f32.mrf.mxu0 }
  0xee   : > { %v598_v61 = vadd.f32 %v2928_v20, %v597_v43 }
  0xef   : > { %v2436_v44 = vpop.f32.mrf.mxu0  ;;  %v667_v45 = vpop.f32.mrf.mxu1 }
  0xf0   : > { %v668_v2 = vadd.f32 %v2933_v21, %v667_v45 }
  0xf1   : > { %v2447_v46 = vpop.f32.mrf.mxu1 }
 0x151   : > { %v759_v48 = vpop.f32.mrf.mxu0 }
 0x152   : > { %v760_v49 = vadd.f32 %v759_v48, %v688_v47 }
 0x153   : > { %v2458_v50 = vpop.f32.mrf.mxu0 }
 0x154   : > { %2493 = vmatpush3.xpose.msk.msra.mxu0 %vm1030_vm2, %v760_v49 }
 0x155   : > { %2497 = vmatprep.subr.mxu0 %v2707_v4 }
 0x157   : > { %v848_v53 = vpop.f32.mrf.mxu1  ;;  %2495 = vmatmul.mubr.msk.f32.vlgmr.msra.gmra.mxu0 %vm1030_vm2, %v458_v51 }
 0x158   : > { %v2982_v54 = vadd.f32 %v848_v53, %v780_v52  ;;  %2499 = vmatprep.mubr.msk.f32.mxu0 %vm2708_vm1, %v2707_v4  ;;  %v338_v53 = vld [vmem:[%s3182_s4] sm:$0xff] }
 0x159   : > { %v2469_v55 = vpop.f32.mrf.mxu1 }
 0x15a   : > { %2498 = vmatpush3.xpose.msk.msra.mxu0 %vm1030_vm2, %v2982_v54  ;;  %v340_v55 = vld [vmem:[%s3182_s4 + $0x10] sm:$0xff] }
 0x15b   : > { %2502 = vmatprep.subr.mxu0 %v2707_v4 }
 0x15d   : > { %2500 = vmatmul.mubr.msk.f32.vlgmr.msra.gmra.mxu0 %vm1030_vm2, %v528_v56 }
 0x15e   : > { %2504 = vmatprep.mubr.msk.f32.mxu0 %vm2708_vm1, %v2707_v4 }
 0x160   : > { %v937_v58 = vpop.f32.mrf.mxu0 }
 0x161   : > { %v2993_v59 = vadd.f32 %v937_v58, %v869_v57  ;;  %v341_v58 = vld [vmem:[%s3182_s4 + $0x18] sm:$0xff] }
 0x162   : > { %v2480_v60 = vpop.f32.mrf.mxu0 }
 0x163   : > { %2503 = vmatpush3.xpose.msk.msra.mxu0 %vm1030_vm2, %v2993_v59 }
 0x164   : > { %2512 = vmatprep.subr.mxu0 %v2707_v4 }
 0x166   : > { %2505 = vmatmul.mubr.msk.f32.vlgmr.msra.gmra.mxu0 %vm1030_vm2, %v598_v61 }
 0x167   : > { %v1026_v63 = vpop.f32.mrf.mxu1  ;;  %2514 = vmatprep.mubr.msk.f32.mxu0 %vm2708_vm1, %v2707_v4 }
 0x168   : > { %v1027_v0 = vadd.f32 %v1026_v63, %v958_v62 }
 0x169   : > { %v2491_v1 = vpop.f32.mrf.mxu1 }
 0x16a   : > { %2508 = vmatpush3.xpose.msk.msra.mxu1 %vm1030_vm2, %v1027_v0 }
 0x16b   : > { %2517 = vmatprep.subr.mxu1 %v2707_v4 }
 0x16d   : > { %2510 = vmatmul.mubr.msk.f32.vlgmr.msra.gmra.mxu1 %vm1030_vm2, %v668_v2 }
 0x16e   : > { %2519 = vmatprep.mubr.msk.f32.mxu1 %vm2708_vm1, %v2707_v4 }
 0x217   : > { %v1103_v3 = vpop.f32.mrf.mxu0 }
 0x218   : > { %v1335_v5 = vsel %vm1030_vm2, %v1103_v3, -inf }
 0x219   : > { %1336 = vmax.xlane.f32.xlu0 %v1335_v5  ;;  %v2496_v6 = vpop.f32.mrf.mxu0 }
 0x21d   : > { %v1179_v7 = vpop.f32.mrf.mxu0 }
 0x21e   : > { %v1338_v8 = vsel %vm1030_vm2, %v1179_v7, -inf }
 0x21f   : > { %1339 = vmax.xlane.f32.xlu1 %v1338_v8  ;;  %v2501_v9 = vpop.f32.mrf.mxu0 }
 0x226   : > { %v1255_v10 = vpop.f32.mrf.mxu0 }
 0x227   : > { %v1341_v11 = vsel %vm1030_vm2, %v1255_v10, -inf }
 0x228   : > { %1342 = vmax.xlane.f32.xlu0 %v1341_v11  ;;  %v2506_v12 = vpop.f32.mrf.mxu0 }
 0x22d   : > { %v1331_v13 = vpop.f32.mrf.mxu1 }
 0x22e   : > { %v1344_v14 = vsel %vm1030_vm2, %v1331_v13, -inf }
 0x22f   : > { %v2511_v15 = vpop.f32.mrf.mxu1  ;;  %1345 = vmax.xlane.f32.xlu0 %v1344_v14  ;;  %v2313_v14 = vld [vmem:[%s3185_s7] ss:$0 sm:$0xff] }
 0x230   : > { %1379 = vrot.lane.b32.xlu1 %v760_v49, %s2706_s21 }
 0x2a2   : > { %v1337_v16 = vpop.xlane.xlu0 %1336 }
 0x2a3   : > { %v1347_v17 = vsub.f32 %v1103_v3, %v1337_v16 }
 0x2a5   : > { %v1351_v18 = vmul.f32 1.442695, %v1347_v17 }
 0x2a7   : > { %2624 = vpow2.f32 %v1351_v18 }
 0x2a8   : > { %v1340_v19 = vpop.xlane.xlu1 %1339 }
 0x2a9   : > { %v1348_v20 = vsub.f32 %v1179_v7, %v1340_v19 }
 0x2ab   : > { %v1353_v21 = vmul.f32 1.442695, %v1348_v20 }
 0x2ac   : > { %v1380_v22 = vpop.permute.xlu1 %1379 }
 0x2ad   : > { %2626 = vpow2.f32 %v1353_v21  ;;  %2513 = vmatpush3.msra.mxu0 %v1380_v22 }
 0x2ae   : > { %2522 = vmatprep.subr.mxu0 %v2707_v4 }
 0x2b1   : > { %v1343_v23 = vpop.xlane.xlu0 %1342 }
 0x2b2   : > { %v1349_v24 = vsub.f32 %v1255_v10, %v1343_v23 }
 0x2b4   : > { %v2625_v25 = vpop.eup %2624  ;;  %v1355_v27 = vmul.f32 1.442695, %v1349_v24 }
 0x2b5   : > { %v1359_v28 = vsel %vm1030_vm2, %v2625_v25, 0.0 }
 0x2b6   : > { %1360 = vadd.xlane.f32.xlu1 %v1359_v28  ;;  %2628 = vpow2.f32 %v1355_v27  ;;  %v345_v27 = vld [vmem:[%s3183_s5 + $0x18] sm:$0xff]  ;;  %v343_v28 = vld [vmem:[%s3183_s5 + $0x8] sm:$0xff] }
 0x2b8   : > { %v1346_v29 = vpop.xlane.xlu0 %1345 }
 0x2b9   : > { %v1350_v30 = vsub.f32 %v1331_v13, %v1346_v29  ;;  %v342_v29 = vld [vmem:[%s3183_s5] sm:$0xff] }
 0x2ba   : > { %v2627_v31 = vpop.eup %2626 }
 0x2bb   : > { %v1357_v32 = vmul.f32 1.442695, %v1350_v30  ;;  %v1362_v33 = vsel %vm1030_vm2, %v2627_v31, 0.0  ;;  %v353_v30 = vld [vmem:[%s3184_s6 + $0x38] sm:$0xff] }
 0x2bc   : > { %1363 = vadd.xlane.f32.xlu0 %v1362_v33  ;;  %v350_v33 = vld [vmem:[%s3184_s6 + $0x20] sm:$0xff] }
 0x2bd   : > { %2630 = vpow2.f32 %v1357_v32  ;;  %v351_v32 = vld [vmem:[%s3184_s6 + $0x28] sm:$0xff] }
 0x2c3   : > { %v2629_v34 = vpop.eup %2628 }
 0x2c4   : > { %v1365_v35 = vsel %vm1030_vm2, %v2629_v34, 0.0 }
 0x2c5   : > { %1366 = vadd.xlane.f32.xlu1 %v1365_v35 }
 0x2ca   : > { %v2631_v36 = vpop.eup %2630 }
 0x2cb   : > { %v1368_v37 = vsel %vm1030_vm2, %v2631_v36, 0.0 }
 0x2cc   : > { %1369 = vadd.xlane.f32.xlu0 %v1368_v37 }
 0x2d6   : > { %1531 = vrot.lane.b32.xlu1 %v2993_v59, %s2706_s21 }
 0x2da   : > { %1607 = vrot.lane.b32.xlu1 %v1027_v0, %s2706_s21 }
 0x2e2   : > { %1455 = vrot.lane.b32.xlu0 %v2982_v54, %s2706_s21  ;;  %v339_v54 = vld [vmem:[%s3182_s4 + $0x8] sm:$0xff] }
 0x33f   : > { %v1361_v38 = vpop.xlane.xlu1 %1360 }
 0x340   : > { %2632 = vrcp.f32 %v1361_v38 }
 0x345   : > { %v1364_v39 = vpop.xlane.xlu0 %1363 }
 0x346   : > { %2634 = vrcp.f32 %v1364_v39  ;;  %v2314_v39 = vld [vmem:[%s3185_s7 + $0x3] ss:$0 sm:$0xff] }
 0x34d   : > { %v2633_v40 = vpop.eup %2632 }
 0x34e   : > { %v1372_v41 = vmul.f32 %v2633_v40, %v2625_v25  ;;  %v1367_v42 = vpop.xlane.xlu1 %1366 }
 0x34f   : > { %2636 = vrcp.f32 %v1367_v42 }
 0x350   : > { %2515 = vmatmul.mubr.msk.f32.vlgmr.msra.gmra.mxu0 %vm1030_vm2, %v1372_v41  ;;  %v2315_v41 = vld [vmem:[%s3185_s7 + $0x4] ss:$0 sm:$0xff] }
 0x351   : > { %2524 = vmatprep.mubr.msk.f32.mxu0 %vm2708_vm1, %v2707_v4 }
 0x352   : > { %v1532_v43 = vpop.permute.xlu1 %1531 }
 0x353   : > { %2523 = vmatpush3.msra.mxu0 %v1532_v43  ;;  %v2635_v45 = vpop.eup %2634 }
 0x354   : > { %2532 = vmatprep.subr.mxu0 %v2707_v4  ;;  %v1374_v47 = vmul.f32 %v2635_v45, %v2627_v31  ;;  %v352_v31 = vld [vmem:[%s3184_s6 + $0x30] sm:$0xff]  ;;  %v347_v45 = vld [vmem:[%s3184_s6 + $0x8] sm:$0xff] }
 0x355   : > { %v1370_v44 = vpop.xlane.xlu0 %1369 }
 0x356   : > { %2638 = vrcp.f32 %v1370_v44  ;;  %v1608_v48 = vpop.permute.xlu1 %1607  ;;  %v348_v44 = vld [vmem:[%s3184_s6 + $0x10] sm:$0xff] }
 0x359   : > { %v1456_v46 = vpop.permute.xlu0 %1455 }
 0x35a   : > { %2518 = vmatpush3.msra.mxu1 %v1456_v46  ;;  %v346_v46 = vld [vmem:[%s3184_s6] sm:$0xff] }
 0x35b   : > { %2520 = vmatmul.mubr.msk.f32.vlgmr.msra.gmra.mxu1 %vm1030_vm2, %v1374_v47  ;;  %2527 = vmatprep.subr.mxu1 %v2707_v4  ;;  %v2316_v47 = vld [vmem:[%s3185_s7 + $0x1] ss:$0 sm:$0xff] }
 0x35c   : > { %2528 = vmatpush3.msra.mxu1 %v1608_v48  ;;  %2529 = vmatprep.mubr.msk.f32.mxu1 %vm2708_vm1, %v2707_v4  ;;  %v2637_v49 = vpop.eup %2636 }
 0x35d   : > { %2537 = vmatprep.subr.mxu1 %v2707_v4  ;;  %v1376_v50 = vmul.f32 %v2637_v49, %v2629_v34  ;;  %v349_v34 = vld [vmem:[%s3184_s6 + $0x18] sm:$0xff] }
 0x35f   : > { %2525 = vmatmul.mubr.msk.f32.vlgmr.msra.gmra.mxu0 %vm1030_vm2, %v1376_v50 }
 0x360   : > { %2534 = vmatprep.mubr.msk.f32.mxu0 %vm2708_vm1, %v2707_v4  ;;  %2533 = vmatpush3.msra.mxu0 %v338_v53 }
 0x361   : > { %2542 = vmatprep.subr.mxu0 %v2707_v4 }
 0x363   : > { %v2639_v51 = vpop.eup %2638 }
 0x364   : > { %v1378_v52 = vmul.f32 %v2639_v51, %v2631_v36 }
 0x366   : > { %2530 = vmatmul.mubr.msk.f32.vlgmr.msra.gmra.mxu1 %vm1030_vm2, %v1378_v52  ;;  %v2318_v52 = vld [vmem:[%s3185_s7 + $0x2] ss:$0 sm:$0xff] }
 0x367   : > { %2539 = vmatprep.mubr.msk.f32.mxu1 %vm2708_vm1, %v2707_v4  ;;  %2538 = vmatpush3.msra.mxu1 %v339_v54 }
 0x368   : > { %2547 = vmatprep.subr.mxu1 %v2707_v4 }
 0x410   : > { %v1451_v56 = vpop.f32.mrf.mxu0 }
 0x411   : > { %2535 = vmatmul.mubr.msk.f32.vlgmr.msra.gmra.mxu0 %vm1030_vm2, %v1451_v56 }
 0x412   : > { %v2516_v57 = vpop.f32.mrf.mxu0  ;;  %2543 = vmatpush3.msra.mxu0 %v340_v55  ;;  %2544 = vmatprep.mubr.msk.f32.mxu0 %vm2708_vm1, %v2707_v4 }
 0x413   : > { %2552 = vmatprep.subr.mxu0 %v2707_v4 }
 0x41b   : > { %v1527_v59 = vpop.f32.mrf.mxu1 }
 0x41c   : > { %2540 = vmatmul.mubr.msk.f32.vlgmr.msra.gmra.mxu1 %vm1030_vm2, %v1527_v59 }
 0x41d   : > { %v2521_v60 = vpop.f32.mrf.mxu1  ;;  %2548 = vmatpush3.msra.mxu1 %v341_v58  ;;  %2549 = vmatprep.mubr.msk.f32.mxu1 %vm2708_vm1, %v2707_v4 }
 0x41e   : > { %2563 = vmatprep.subr.mxu1 %v2707_v4 }
 0x41f   : > { %v1603_v61 = vpop.f32.mrf.mxu0 }
 0x420   : > { %2545 = vmatmul.mubr.msk.f32.vlgmr.msra.gmra.mxu0 %vm1030_vm2, %v1603_v61 }
 0x421   : > { %v2526_v62 = vpop.f32.mrf.mxu0  ;;  %2560 = vmatprep.mubr.msk.f32.mxu0 %vm2708_vm1, %v2707_v4  ;;  %2553 = vmatpush3.msra.mxu0 %v345_v27 }
 0x422   : > { %2554 = vmatprep.subr.mxu0 %v2707_v4 }
 0x426   : > { %v1679_v63 = vpop.f32.mrf.mxu1 }
 0x427   : > { %2550 = vmatmul.mubr.msk.f32.vlgmr.msra.gmra.mxu1 %vm1030_vm2, %v1679_v63 }
 0x428   : > { %v2531_v0 = vpop.f32.mrf.mxu1  ;;  %2579 = vmatprep.mubr.msk.f32.mxu1 %vm2708_vm1, %v2707_v4  ;;  %2564 = vmatpush3.msra.mxu1 %v353_v30 }
 0x429   : > { %2565 = vmatprep.subr.mxu1 %v2707_v4 }
 0x42a   : > { %2566 = vmatpush3.msra.mxu1 %v352_v31 }
 0x42b   : > { %2567 = vmatprep.subr.mxu1 %v2707_v4 }
 0x42c   : > { %2568 = vmatpush3.msra.mxu1 %v351_v32 }
 0x42d   : > { %2569 = vmatprep.subr.mxu1 %v2707_v4 }
 0x42e   : > { %2570 = vmatpush3.msra.mxu1 %v350_v33 }
 0x42f   : > { %2571 = vmatprep.subr.mxu1 %v2707_v4 }
 0x430   : > { %2572 = vmatpush3.msra.mxu1 %v349_v34 }
 0x431   : > { %2573 = vmatprep.subr.mxu1 %v2707_v4 }
 0x432   : > { %2574 = vmatpush3.msra.mxu1 %v348_v44 }
 0x433   : > { %2575 = vmatprep.subr.mxu1 %v2707_v4 }
 0x434   : > { %2576 = vmatpush3.msra.mxu1 %v347_v45 }
 0x435   : > { %2577 = vmatprep.subr.mxu1 %v2707_v4 }
 0x436   : > { %2578 = vmatpush3.msra.mxu1 %v346_v46 }
 0x4d1   : > { %v1752_v1 = vpop.f32.mrf.mxu0 }
 0x4d2   : > { %v1975_v9 = vsel %vm387_vm0, %v1752_v1, 0.0 }
 0x4d3   : > { %v2536_v2 = vpop.f32.mrf.mxu0 }
 0x4d4   : > { %v2320_v2 = vld [vmem:[%s3185_s7 + $0x5] ss:$0 sm:$0xff] }
 0x4dc   : > { %v1825_v3 = vpop.f32.mrf.mxu1 }
 0x4dd   : > { %v1976_v7 = vsel %vm387_vm0, %v1825_v3, 0.0 }
 0x4de   : > { %v2541_v5 = vpop.f32.mrf.mxu1  ;;  %v1977_v11 = vadd.f32 %v1976_v7, %v1975_v9 }
 0x4df   : > { %v2321_v5 = vld [vmem:[%s3185_s7 + $0x6] ss:$0 sm:$0xff] }
 0x4e0   : > { %v1898_v6 = vpop.f32.mrf.mxu0 }
 0x4e1   : > { %v1978_v10 = vsel %vm387_vm0, %v1898_v6, 0.0 }
 0x4e2   : > { %v2546_v8 = vpop.f32.mrf.mxu0  ;;  %v1979_v12 = vadd.f32 %v1978_v10, %v1977_v11 }
 0x4e7   : > { %v1971_v13 = vpop.f32.mrf.mxu1 }
 0x4e8   : > { %v1980_v15 = vsel %vm387_vm0, %v1971_v13, 0.0 }
 0x4e9   : > { %v1981_v16 = vadd.f32 %v1980_v15, %v1979_v12  ;;  %v2551_v17 = vpop.f32.mrf.mxu1 }
 0x4eb   : > { %v1986_v18 = vadd.f32 %v2313_v14, %v1981_v16 }
 0x4ed   : > { %v1987_v19 = vadd.f32 %v1986_v18, %v2947_v26  ;;  %v344_v26 = vld [vmem:[%s3183_s5 + $0x10] sm:$0xff] }
 0x4ee   : > { %2555 = vmatpush3.msra.mxu0 %v344_v26 }
 0x4ef   : > { %v1988_v20 = vsel %vm387_vm0, %v1987_v19, 0.0  ;;  %2556 = vmatprep.subr.mxu0 %v2707_v4 }
 0x4f0   : > { %1989 = vadd.xlane.f32.xlu0 %v1988_v20  ;;  %2557 = vmatpush3.msra.mxu0 %v343_v28 }
 0x4f1   : > { %2558 = vmatprep.subr.mxu0 %v2707_v4 }
 0x4f2   : > { %2559 = vmatpush3.msra.mxu0 %v342_v29 }
 0x579   : > { %v1990_v21 = vpop.xlane.xlu0 %1989 }
 0x57a   : > { %v1992_v22 = vmul.f32 0.03125, %v1990_v21 }
 0x57c   : > { %v1993_v23 = vsub.f32 %v1987_v19, %v1992_v22 }
 0x57e   : > { %v1994_v24 = vmul.f32 %v1993_v23, %v1993_v23 }
 0x580   : > { %v1995_v25 = vsel %vm387_vm0, %v1994_v24, 0.0 }
 0x581   : > { %1996 = vadd.xlane.f32.xlu1 %v1995_v25 }
 0x60a   : > { %v1997_v35 = vpop.xlane.xlu1 %1996 }
 0x60b   : > { %v1998_v36 = vmul.f32 0.03125, %v1997_v35 }
 0x60d   : > { %v1999_v37 = vadd.f32 1e-05, %v1998_v36 }
 0x60f   : > { %2640 = vrsqrt.f32 %v1999_v37 }
 0x61c   : > { %v2641_v38 = vpop.eup %2640 }
 0x61d   : > { %v2001_v40 = vmul.f32 %v2641_v38, %v1993_v23 }
 0x61f   : > { %v2006_v42 = vmul.f32 %v2314_v39, %v2001_v40 }
 0x621   : > { %v2011_v43 = vadd.f32 %v2315_v41, %v2006_v42 }
 0x623   : > { %2561 = vmatmul.mubr.msk.f32.vlgmr.msra.gmra.mxu0 %vm387_vm0, %v2011_v43 }
 0x6e3   : > { %v2085_v48 = vpop.f32.mrf.mxu0 }
 0x6e4   : > { %v2086_v49 = vadd.f32 %v2316_v47, %v2085_v48 }
 0x6e5   : > { %v2562_v50 = vpop.f32.mrf.mxu0 }
 0x6e6   : > { %v2089_v51 = vmax.f32 %v2086_v49, 0.0 }
 0x6e8   : > { %2580 = vmatmul.mubr.msk.f32.vlgmr.msra.gmra.mxu1 %vm2094_vm3, %v2089_v51 }
 0x7a8   : > { %v2164_v4 = vpop.f32.mrf.mxu1 }
 0x7a9   : > { %v2165_v53 = vadd.f32 %v2318_v52, %v2164_v4 }
 0x7aa   : > { %v2581_v54 = vpop.f32.mrf.mxu1 }
 0x7ab   : > { %v2168_v55 = vadd.f32 %v2165_v53, %v2011_v43 }
 0x7ad   : > { %v2169_v56 = vsel %vm387_vm0, %v2168_v55, 0.0 }
 0x7ae   : > { %2170 = vadd.xlane.f32.xlu0 %v2169_v56 }
 0x837   : > { %v2171_v57 = vpop.xlane.xlu0 %2170 }
 0x838   : > { %v2172_v58 = vmul.f32 0.03125, %v2171_v57 }
 0x83a   : > { %v2173_v59 = vsub.f32 %v2168_v55, %v2172_v58 }
 0x83c   : > { %v2174_v60 = vmul.f32 %v2173_v59, %v2173_v59 }
 0x83e   : > { %v2175_v61 = vsel %vm387_vm0, %v2174_v60, 0.0 }
 0x83f   : > { %2176 = vadd.xlane.f32.xlu0 %v2175_v61 }
 0x8c8   : > { %v2177_v62 = vpop.xlane.xlu0 %2176 }
 0x8c9   : > { %v2178_v63 = vmul.f32 0.03125, %v2177_v62 }
 0x8cb   : > { %v2179_v0 = vadd.f32 1e-05, %v2178_v63 }
 0x8cd   : > { %2642 = vrsqrt.f32 %v2179_v0 }
 0x8da   : > { %v2643_v1 = vpop.eup %2642 }
 0x8db   : > { %v2181_v3 = vmul.f32 %v2643_v1, %v2173_v59 }
 0x8dd   : > { %v2186_v6 = vmul.f32 %v2320_v2, %v2181_v3 }
 0x8df   : > { %v2191_v7 = vadd.f32 %v2321_v5, %v2186_v6 }
 0x8e1   : > { %2192 = vst.msk [vmem:[%s309_s20] sm:$0xff] %vm387_vm0, %v2191_v7 }
 0x8e2   : > { %2657 = shalt.err (!%p2654_p3)
}
 0x8e3   : > { %s2658_s25 = scalar_lea.hbm %s2205_s26, 128  ;;  %s2662_s19 = scalar_lea.hbm %s3186_s8, 256 }
 0x8e4   : > { %p2659_p4 = scmp.ne.s32.totalorder %s2205_s26, %s2658_s25  ;;  %p2663_p9 = scmp.lt.s32.totalorder %s2205_s26, %s3186_s8 }
 0x8e5   : > { %p2664_p10 = scmp.lt.s32.totalorder %s2662_s19, %s2658_s25 }
 0x8e6   : > { %p2660_p7 = pnand %p2659_p4, %p2793_p5 }
 0x8e7   : > { %p2665_p11 = por %p2664_p10, %p2663_p9 }
 0x8e8   : > { %p2661_p8 = pneg %p2660_p7 }
 0x8ea   : > { %p2666_p12 = pnand %p2665_p11, %p2661_p8 }
 0x8ec   : > { %2669 = shalt.err (!%p2666_p12)
}
 0x8ed   : > { %2582 = dma.vmem_to_hbm [thread:$0]  (%p2793_p5), %s2208_s22, 128, %s2205_s26, %s2194_s13  }
 0x8ee PF: > { %p2588_p13 = scmp.ge.s32.totalorder %s2704_s30, 2  ;;  %s2219_s21 = sand.u32 1, %s2692_s27  }
 0x8ef   : > { %s2220_s10 = scalar_lea.sflag [#allocation3], %s2219_s21 }
 0x8f0   : > { %p2585_p0 = pnand %p2588_p13, %p2797_p6 }
 0x8f2   : > { %p2586_p1 = pneg %p2585_p0 }
 0x8f4   : > { %2687 = dma.done.wait (%p2586_p1), %s2220_s10, 128  }
 0x8f5   : > { %2689 = vsyncadd (%p2586_p1), %s2220_s10, 4294967168  ;;  %p18_p2 = scmp.ge.s32.totalorder %s2780_s11, 4   ;;  %s3189_s27 = smov %s2696_s28 }
 0x8f6   : > { %s3190_s28 = smov %s2700_s29  ;;  %s3191_s29 = smov %s2791_s14 }
 0x8f7   : > { %s3192_s30 = smov %s2780_s11  ;;  %20 = sbr.rel (!%p18_p2) target bundleno = 3 (0x3), region = 90 }
 0x8fc   :  { %2225 = vsyncpa [#allocation3], 1 }
 0x8fd   :  { %2227 = vsyncpa [#allocation3 + $0x1], 1 }

</bundles_post_ra>
